<compile_context>
chip_gen: v7x
topology: tpu7x:2x2x1
jax: 0.10.0
libtpu: 0.0.40
codegen_flags: <defaults>
</compile_context>

<pallas_src>
import jax
import jax.numpy as jnp
from jax.experimental import pallas as pl
from jax.experimental.pallas import tpu as pltpu

_TILE_B = 2048      # max batch rows per grid step (multiple of 8 and 128)
_SPLIT_MIN_B = 1024  # below this, one tile; splitting smaller batches would
                     # not amortize the ~0.35us per-grid-step overhead


def _round_up(x, m):
    return pl.cdiv(x, m) * m


def _plan_batch(B, tile_cap):
    """Pick (tile_rows, padded_batch).

    * B < 1024: single tile, padded only to the 8-row sublane quantum.
    * B >= 1024: n = max(2, ceil(B / tile_cap)) grid steps (>= 2 so both v7x
      TensorCores get work), tile = ceil(B/n) rounded up to 128 rows
      (<= tile_cap by construction), pad <= 128 rows per step.
    """
    if B < _SPLIT_MIN_B:
        tb = _round_up(B, 8)
        return tb, tb
    n = max(2, pl.cdiv(B, tile_cap))
    tb = _round_up(pl.cdiv(B, n), 128)
    return tb, n * tb


def _value_net_kernel(x_ref, w1_ref, b1_ref, w2_ref, b2_ref, w3_ref, b3_ref, o_ref):
    # x tile: (TB, D) -> bf16 for the MXU (no-op if the caller already passes
    # bf16 activations); accumulation stays f32, bias/ReLU stay f32 on the VPU
    # (v5e has no bf16 VPU).
    x = x_ref[...].astype(jnp.bfloat16)
    h1 = jnp.dot(x, w1_ref[...], preferred_element_type=jnp.float32)        # (TB, H) f32
    h1 = jnp.maximum(h1 + b1_ref[...], 0.0)
    h2 = jnp.dot(h1.astype(jnp.bfloat16), w2_ref[...],
                 preferred_element_type=jnp.float32)                         # (TB, H) f32
    h2 = jnp.maximum(h2 + b2_ref[...], 0.0)
    # Final 256 -> 1 layer: VPU multiply + lane (XLU) reduction instead of an
    # N=1 MXU matmul (which would use 1/256 of the MXU output lanes).
    out = jnp.sum(h2 * w3_ref[...], axis=-1, keepdims=True) + b3_ref[...]    # (TB, 1) f32
    o_ref[...] = out


def prepare_params(params):
    """One-time conversion of f32 (in, out)-layout params to the kernel-ready
    layout: bf16 MXU weights for layers 1-2, the 256->1 weight as an f32
    (1, H) row (consumed on the VPU+XLU, not the MXU), f32 (1, out) biases.
    Call this ONCE and reuse the result; value_net_forward does no casts."""
    w1, b1, w2, b2, w3, b3 = params
    H = w1.shape[1]
    return (
        w1.astype(jnp.bfloat16),
        b1.reshape(1, H).astype(jnp.float32),
        w2.astype(jnp.bfloat16),
        b2.reshape(1, H).astype(jnp.float32),
        w3.reshape(1, H).astype(jnp.float32),
        b3.reshape(1, 1).astype(jnp.float32),
    )


def value_net_forward(state, prepared_params, *, tile_cap=_TILE_B):
    """state: (B, state_dim) f32 (or bf16) -> (B, 1) f32.

    prepared_params must come from prepare_params() (kernel-ready layout)."""
    w1_bf, b1, w2_bf, b2, w3_row, b3 = prepared_params
    B, D = state.shape
    H = w1_bf.shape[1]

    tb, pb = _plan_batch(B, tile_cap)
    # Pad only to the small tiling quantum chosen above (often pb == B, i.e.
    # no pad op / no extra HBM round trip at all). Pad rows are independent
    # and their outputs are discarded by the final slice.
    state_p = state if pb == B else jnp.pad(state, ((0, pb - B), (0, 0)))
    grid = (pb // tb,)

    out = pl.pallas_call(
        _value_net_kernel,
        out_shape=jax.ShapeDtypeStruct((pb, 1), jnp.float32),
        grid_spec=pltpu.PrefetchScalarGridSpec(
            num_scalar_prefetch=0,
            grid=grid,
            in_specs=[
                # x: streamed per batch tile (double-buffered by the pipeline).
                pl.BlockSpec((tb, D), lambda i: (i, 0)),
                # Weights/biases: constant index_map -> DMA'd once, VMEM-resident.
                pl.BlockSpec((D, H), lambda i: (0, 0)),    # w1 (bf16)
                pl.BlockSpec((1, H), lambda i: (0, 0)),    # b1 (f32)
                pl.BlockSpec((H, H), lambda i: (0, 0)),    # w2 (bf16)
                pl.BlockSpec((1, H), lambda i: (0, 0)),    # b2 (f32)
                pl.BlockSpec((1, H), lambda i: (0, 0)),    # w3 row (f32)
                pl.BlockSpec((1, 1), lambda i: (0, 0)),    # b3 (f32)
            ],
            # (tb, 1) output blocks: masked stores, but the kernel is MXU-bound
            # so they are hidden (review item 6: only revisit if MXU path speeds up).
            out_specs=pl.BlockSpec((tb, 1), lambda i: (i, 0)),
        ),
        compiler_params=pltpu.CompilerParams(
            dimension_semantics=("parallel",),       # batch tiles over TCs (v7x)
            vmem_limit_bytes=48 * 1024 * 1024,       # ~8 MiB used at tb=2048; < v7x 64 MiB
        ),
    )(state_p, w1_bf, b1, w2_bf, b2, w3_row, b3)

    return out[:B]


def init_params(key, state_dim, hidden=256):
    """Deterministic synthetic init. Weights stored as (in, out) = PyTorch W.T.
    Biases kept 2D (1, out)."""
    k1, k2, k3 = jax.random.split(key, 3)

    def uniform_fan_in(k, shape, fan_in):
        bound = 1.0 / jnp.sqrt(fan_in)
        return jax.random.uniform(k, shape, jnp.float32, -bound, bound)

    w1 = uniform_fan_in(k1, (state_dim, hidden), state_dim)
    b1 = uniform_fan_in(jax.random.fold_in(k1, 1), (1, hidden), state_dim)
    w2 = uniform_fan_in(k2, (hidden, hidden), hidden)
    b2 = uniform_fan_in(jax.random.fold_in(k2, 1), (1, hidden), hidden)
    w3 = uniform_fan_in(k3, (hidden, 1), hidden)
    b3 = uniform_fan_in(jax.random.fold_in(k3, 1), (1, 1), hidden)
    return (w1, b1, w2, b2, w3, b3)


def reference_forward_f32(state, params):
    """Exact PyTorch-module semantics (pure f32)."""
    w1, b1, w2, b2, w3, b3 = params
    h1 = jnp.maximum(state @ w1 + b1, 0.0)
    h2 = jnp.maximum(h1 @ w2 + b2, 0.0)
    return h2 @ w3 + b3


def reference_forward_matched(state, params):
    """Reference matching the kernel's mixed precision (bf16 MXU inputs, f32 accum)."""
    w1, b1, w2, b2, w3, b3 = params
    xb = state.astype(jnp.bfloat16)
    h1 = jnp.dot(xb, w1.astype(jnp.bfloat16), preferred_element_type=jnp.float32) + b1
    h1 = jnp.maximum(h1, 0.0)
    h2 = jnp.dot(h1.astype(jnp.bfloat16), w2.astype(jnp.bfloat16),
                 preferred_element_type=jnp.float32) + b2
    h2 = jnp.maximum(h2, 0.0)
    return h2 @ w3 + b3


if __name__ == "__main__":
    key = jax.random.PRNGKey(0)
    k_params, k_state, k_state2 = jax.random.split(key, 3)

    batch = 8
    state_dim = 32

    raw_params = init_params(k_params, state_dim)
    params = prepare_params(raw_params)   # one-time kernel-ready layout (opt 3)

    # Small-batch path: single (8, 32) tile, no padding, grid=(1,).
    state = jax.random.normal(k_state, (batch, state_dim), jnp.float32)
    out = jax.block_until_ready(value_net_forward(state, params))
    assert out.shape == (batch, 1), out.shape

    ref_m = reference_forward_matched(state, raw_params)
    ref_f = reference_forward_f32(state, raw_params)
    assert jnp.allclose(out, ref_m, atol=1e-3, rtol=1e-3), "mismatch vs matched-precision reference"
    assert jnp.allclose(out, ref_f, atol=1e-1, rtol=1e-1), "mismatch vs f32 reference (semantics)"

    # Multi-tile path: B=2500 -> tb=1280, padded batch 2560 (60 pad rows,
    # 2 grid steps, one per v7x TensorCore) instead of the old 4096/1596.
    big_batch = 2500
    state_big = jax.random.normal(k_state2, (big_batch, state_dim), jnp.float32)
    out_big = jax.block_until_ready(value_net_forward(state_big, params))
    assert out_big.shape == (big_batch, 1), out_big.shape
    assert jnp.allclose(out_big, reference_forward_matched(state_big, raw_params),
                        atol=1e-3, rtol=1e-3), "mismatch on multi-tile batch"

    print("KERNEL_OK")
</pallas_src>

<mosaic_0001>
module attributes {stable_mosaic.version = 11 : i64} {
  func.func @_value_net_kernel(%arg0: i32, %arg1: memref<8x32xf32, #tpu.memory_space<vmem>>, %arg2: memref<32x256xbf16, #tpu.memory_space<vmem>>, %arg3: memref<1x256xf32, #tpu.memory_space<vmem>>, %arg4: memref<256x256xbf16, #tpu.memory_space<vmem>>, %arg5: memref<1x256xf32, #tpu.memory_space<vmem>>, %arg6: memref<1x256xf32, #tpu.memory_space<vmem>>, %arg7: memref<1x1xf32, #tpu.memory_space<vmem>>, %arg8: memref<8x1xf32, #tpu.memory_space<vmem>>) attributes {dimension_semantics = [#tpu.dimension_semantics<parallel>], iteration_bounds = array<i64: 1>, scalar_prefetch = 0 : i64, scratch_operands = 0 : i64, tpu.core_type = #tpu.core_type<tc>, window_params = [{transform_indices = @transform_0, window_bounds = array<i64: 8, 32>}, {pipeline_mode = #tpu.pipeline_mode<synchronous>, transform_indices = @transform_1, window_bounds = array<i64: 32, 256>}, {pipeline_mode = #tpu.pipeline_mode<synchronous>, transform_indices = @transform_2, window_bounds = array<i64: 1, 256>}, {pipeline_mode = #tpu.pipeline_mode<synchronous>, transform_indices = @transform_3, window_bounds = array<i64: 256, 256>}, {pipeline_mode = #tpu.pipeline_mode<synchronous>, transform_indices = @transform_4, window_bounds = array<i64: 1, 256>}, {pipeline_mode = #tpu.pipeline_mode<synchronous>, transform_indices = @transform_5, window_bounds = array<i64: 1, 256>}, {pipeline_mode = #tpu.pipeline_mode<synchronous>, transform_indices = @transform_6, window_bounds = array<i64: 1, 1>}, {transform_indices = @transform_7, window_bounds = array<i64: 8, 1>}]} {
    %c0 = arith.constant 0 : index
    %c0_0 = arith.constant 0 : index
    %0 = vector.load %arg1[%c0, %c0_0] : memref<8x32xf32, #tpu.memory_space<vmem>>, vector<8x32xf32>
    %1 = arith.truncf %0 : vector<8x32xf32> to vector<8x32xbf16>
    %c0_1 = arith.constant 0 : index
    %c0_2 = arith.constant 0 : index
    %2 = vector.load %arg2[%c0_1, %c0_2] : memref<32x256xbf16, #tpu.memory_space<vmem>>, vector<32x256xbf16>
    %cst = arith.constant dense<0.000000e+00> : vector<8x256xf32>
    %3 = tpu.matmul %1, %2, %cst {dimension_numbers = #tpu.dot_dimension_numbers<[1], [0], [0], [1], [0, 0, 1, 1], [], []>} : vector<8x32xbf16>, vector<32x256xbf16>, vector<8x256xf32> -> vector<8x256xf32>
    %c0_3 = arith.constant 0 : index
    %c0_4 = arith.constant 0 : index
    %4 = vector.load %arg3[%c0_3, %c0_4] : memref<1x256xf32, #tpu.memory_space<vmem>>, vector<1x256xf32>
    %5 = vector.broadcast %4 : vector<1x256xf32> to vector<8x256xf32>
    %6 = arith.addf %3, %5 : vector<8x256xf32>
    %cst_5 = arith.constant 0.000000e+00 : f32
    %7 = vector.broadcast %cst_5 : f32 to vector<8x256xf32>
    %8 = arith.maximumf %6, %7 : vector<8x256xf32>
    %9 = arith.truncf %8 : vector<8x256xf32> to vector<8x256xbf16>
    %c0_6 = arith.constant 0 : index
    %c0_7 = arith.constant 0 : index
    %10 = vector.load %arg4[%c0_6, %c0_7] : memref<256x256xbf16, #tpu.memory_space<vmem>>, vector<256x256xbf16>
    %cst_8 = arith.constant dense<0.000000e+00> : vector<8x256xf32>
    %11 = tpu.matmul %9, %10, %cst_8 {dimension_numbers = #tpu.dot_dimension_numbers<[1], [0], [0], [1], [0, 0, 1, 1], [], []>} : vector<8x256xbf16>, vector<256x256xbf16>, vector<8x256xf32> -> vector<8x256xf32>
    %c0_9 = arith.constant 0 : index
    %c0_10 = arith.constant 0 : index
    %12 = vector.load %arg5[%c0_9, %c0_10] : memref<1x256xf32, #tpu.memory_space<vmem>>, vector<1x256xf32>
    %13 = vector.broadcast %12 : vector<1x256xf32> to vector<8x256xf32>
    %14 = arith.addf %11, %13 : vector<8x256xf32>
    %cst_11 = arith.constant 0.000000e+00 : f32
    %15 = vector.broadcast %cst_11 : f32 to vector<8x256xf32>
    %16 = arith.maximumf %14, %15 : vector<8x256xf32>
    %c0_12 = arith.constant 0 : index
    %c0_13 = arith.constant 0 : index
    %17 = vector.load %arg6[%c0_12, %c0_13] : memref<1x256xf32, #tpu.memory_space<vmem>>, vector<1x256xf32>
    %18 = vector.broadcast %17 : vector<1x256xf32> to vector<8x256xf32>
    %19 = arith.mulf %16, %18 : vector<8x256xf32>
    %cst_14 = arith.constant dense<0.000000e+00> : vector<8xf32>
    %20 = vector.multi_reduction <add>, %19, %cst_14 [1] : vector<8x256xf32> to vector<8xf32>
    %21 = vector.shape_cast %20 : vector<8xf32> to vector<8x1xf32>
    %c0_15 = arith.constant 0 : index
    %c0_16 = arith.constant 0 : index
    %22 = vector.load %arg7[%c0_15, %c0_16] : memref<1x1xf32, #tpu.memory_space<vmem>>, vector<1x1xf32>
    %23 = vector.broadcast %22 : vector<1x1xf32> to vector<8x1xf32>
    %24 = arith.addf %21, %23 : vector<8x1xf32>
    %c0_17 = arith.constant 0 : index
    %c0_18 = arith.constant 0 : index
    %25 = vector.load %arg8[%c0_17, %c0_18] : memref<8x1xf32, #tpu.memory_space<vmem>>, vector<8x1xf32>
    tpu.vector_store %arg8[%c0_17, %c0_18], %24 {strides = array<i32>} : memref<8x1xf32, #tpu.memory_space<vmem>>, vector<8x1xf32>,
    return
  }
  func.func @transform_0(%arg0: i32) -> (i32, i32) {
    %c0_i32 = arith.constant 0 : i32
    %c0_i32_0 = arith.constant 0 : i32
    return %arg0, %c0_i32 : i32, i32
  }
  func.func @transform_1(%arg0: i32) -> (i32, i32) {
    %c0_i32 = arith.constant 0 : i32
    %c0_i32_0 = arith.constant 0 : i32
    %c0_i32_1 = arith.constant 0 : i32
    return %c0_i32, %c0_i32_0 : i32, i32
  }
  func.func @transform_2(%arg0: i32) -> (i32, i32) {
    %c0_i32 = arith.constant 0 : i32
    %c0_i32_0 = arith.constant 0 : i32
    %c0_i32_1 = arith.constant 0 : i32
    return %c0_i32, %c0_i32_0 : i32, i32
  }
  func.func @transform_3(%arg0: i32) -> (i32, i32) {
    %c0_i32 = arith.constant 0 : i32
    %c0_i32_0 = arith.constant 0 : i32
    %c0_i32_1 = arith.constant 0 : i32
    return %c0_i32, %c0_i32_0 : i32, i32
  }
  func.func @transform_4(%arg0: i32) -> (i32, i32) {
    %c0_i32 = arith.constant 0 : i32
    %c0_i32_0 = arith.constant 0 : i32
    %c0_i32_1 = arith.constant 0 : i32
    return %c0_i32, %c0_i32_0 : i32, i32
  }
  func.func @transform_5(%arg0: i32) -> (i32, i32) {
    %c0_i32 = arith.constant 0 : i32
    %c0_i32_0 = arith.constant 0 : i32
    %c0_i32_1 = arith.constant 0 : i32
    return %c0_i32, %c0_i32_0 : i32, i32
  }
  func.func @transform_6(%arg0: i32) -> (i32, i32) {
    %c0_i32 = arith.constant 0 : i32
    %c0_i32_0 = arith.constant 0 : i32
    %c0_i32_1 = arith.constant 0 : i32
    return %c0_i32, %c0_i32_0 : i32, i32
  }
  func.func @transform_7(%arg0: i32) -> (i32, i32) {
    %c0_i32 = arith.constant 0 : i32
    %c0_i32_0 = arith.constant 0 : i32
    return %arg0, %c0_i32 : i32, i32
  }
}

</mosaic_0001>

<bundles_post_ra>
// kernel: tpu_custom_call.1
= control target key start
LH: loop header
LB: loop body
LE: loop exit
PB: predicated region body
PF: predicated region fallthrough
CT: control target
= control target key end

     0   :  { %s706_s0 = inlined_call_operand.hbm [shape: f32[8,32], index: 0, kind: input, shape index: {}]   ;;  %s707_s1 = inlined_call_operand.hbm [shape: bf16[32,256], index: 1, kind: input, shape index: {}]   ;;  %s708_s2 = inlined_call_operand.vmem [shape: f32[1,256], index: 2, kind: input, shape index: {}]   ;;  %s709_s3 = inlined_call_operand.hbm [shape: bf16[256,256], index: 3, kind: input, shape index: {}]   ;;  %s710_s4 = inlined_call_operand.vmem [shape: f32[1,256], index: 4, kind: input, shape index: {}]   ;;  %s711_s5 = inlined_call_operand.vmem [shape: f32[1,256], index: 5, kind: input, shape index: {}]   ;;  %s712_s6 = inlined_call_operand.<no memory space> [shape: f32[1,1], index: 6, kind: input, shape index: {}]   ;;  %s713_s7 = inlined_call_operand.vmem [shape: f32[8,1], index: 7, kind: output, shape index: {}]  }
   0x1   :  { %v12_v0 = vstv %s712_s6 }
   0x2   :  { %13 = vst [vmem:[#allocation2] sm:$0x1] %v12_v0 }
   0x3   :  { %14 = vsyncpa [#allocation4], 0 }
   0x4   :  { %15 = vsyncpa [#allocation6], 0  ;;  %s603_s26 = smov [#allocation5]   ;;  %s533_s30 = scalar_lea.hbm %s707_s1, 512 }
   0x5   :  { %s31_s27 = sshll.u32 %s603_s26, 4  ;;  %p534_p0 = scmp.ne.s32.totalorder %s707_s1, %s533_s30  ;;  %s32_s27 = int_to_ptr.vmem [resolvable:$true] %s31_s27 }
   0x6   :  { %p537_p1 = scmp.lt.u32.totalorder %s533_s30, %s707_s1 }
   0x8   :  { %p539_p2 = pnand %p537_p1, %p534_p0 }
   0xa   :  { %542 = shalt.err (!%p539_p2)
}
   0xb   :  { %s543_s6 = scalar_lea.vmem %s32_s27, 512  ;;  %p548_p4 = scmp.lt.s32.totalorder %s32_s27, %s32_s27 }
   0xc   :  { %p544_p3 = scmp.ne.s32.totalorder %s32_s27, %s543_s6  ;;  %p549_p5 = scmp.lt.s32.totalorder %s543_s6, %s543_s6 }
   0xe   :  { %p550_p6 = por %p549_p5, %p548_p4 }
  0x10   :  { %p551_p7 = pnand %p550_p6, %p544_p3 }
  0x12   :  { %554 = shalt.err (!%p551_p7)
}
  0x13   :  { %s604_s12 = smov 128   ;;  %s605_s13 = smov 8  }
  0x14   :  { %37 = dma.hbm_to_vmem [thread:$0]  %s707_s1, 512, %s32_s27, [#allocation6], %s604_s12, %s604_s12, %s605_s13  }
  0x15   :  { %s606_s16 = smov [#allocation3]   ;;  %s607_s18 = smov [#allocation7]  }
  0x16   :  { %s22_s17 = sshll.u32 %s606_s16, 4  ;;  %s45_s19 = sshll.u32 %s607_s18, 4  ;;  %s23_s17 = int_to_ptr.vmem [resolvable:$true] %s22_s17  ;;  %s46_s19 = int_to_ptr.vmem [resolvable:$true] %s45_s19 }
  0x17   :  { %s555_s22 = scalar_lea.hbm %s706_s0, 128 }
  0x18   :  { %p556_p8 = scmp.ne.s32.totalorder %s706_s0, %s555_s22  ;;  %p559_p9 = scmp.lt.u32.totalorder %s555_s22, %s706_s0 }
  0x1a   :  { %p561_p10 = pnand %p559_p9, %p556_p8 }
  0x1c   :  { %564 = shalt.err (!%p561_p10)
}
  0x1d   :  { %s565_s1 = scalar_lea.vmem %s23_s17, 128  ;;  %p570_p12 = scmp.lt.s32.totalorder %s23_s17, %s23_s17 }
  0x1e   :  { %p566_p11 = scmp.ne.s32.totalorder %s23_s17, %s565_s1  ;;  %p571_p13 = scmp.lt.s32.totalorder %s565_s1, %s565_s1 }
  0x20   :  { %p572_p0 = por %p571_p13, %p570_p12 }
  0x22   :  { %p573_p1 = pnand %p572_p0, %p566_p11 }
  0x24   :  { %576 = shalt.err (!%p573_p1)
}
  0x25   :  { %25 = dma.hbm_to_vmem [thread:$0]  %s706_s0, 128, %s23_s17, [#allocation4]  }
  0x26   :  { %s577_s8 = scalar_lea.hbm %s709_s3, 4096 }
  0x27   :  { %p578_p2 = scmp.ne.s32.totalorder %s709_s3, %s577_s8  ;;  %p581_p3 = scmp.lt.u32.totalorder %s577_s8, %s709_s3 }
  0x29   :  { %p583_p4 = pnand %p581_p3, %p578_p2 }
  0x2b   :  { %586 = shalt.err (!%p583_p4)
}
  0x2c   :  { %s587_s14 = scalar_lea.vmem %s46_s19, 4096  ;;  %p592_p6 = scmp.lt.s32.totalorder %s46_s19, %s46_s19 }
  0x2d   :  { %p588_p5 = scmp.ne.s32.totalorder %s46_s19, %s587_s14  ;;  %p593_p7 = scmp.lt.s32.totalorder %s587_s14, %s587_s14 }
  0x2f   :  { %p594_p8 = por %p593_p7, %p592_p6 }
  0x31   :  { %p595_p9 = pnand %p594_p8, %p588_p5 }
  0x33   :  { %598 = shalt.err (!%p595_p9)
}
  0x34   :  { %51 = dma.hbm_to_vmem [thread:$0]  %s709_s3, 4096, %s46_s19, [#allocation6], %s604_s12, %s604_s12, %s605_s13  }
  0x35   :  { %599 = dma.done.wait [#allocation4], 128  }
  0x36   :  { %600 = vsyncadd [#allocation4], 4294967168 }
  0x37   :  { %601 = dma.done.wait [#allocation6], 4608  }
  0x38   :  { %602 = vsyncadd [#allocation6], 4294962688  ;;  %v608_v1 = vmov 0   ;;  %v479_v2 = vld [vmem:[#allocation5 + $0x4] ss:$8 sps:$4 sm:$0xff]   ;;  %v68_v6 = vld [vmem:[#allocation3] sm:$0xff]  ;;  %v76_v40 = vlaneseq }
  0x39   :  { %142 = vmatprep.mubr.bf16.mxu0 %v608_v1  ;;  %v481_v3 = vld [vmem:[#allocation5] ss:$8 sps:$4 sm:$0xff]   ;;  %110 = vmatprep.subr.bf16.mxu0 %v479_v2  ;;  %v482_v4 = vld [vmem:[#allocation5 + $0x14] ss:$8 sps:$4 sm:$0xff]   ;;  %v484_v5 = vld [vmem:[#allocation5 + $0x10] ss:$8 sps:$4 sm:$0xff]   ;;  %v69_v10 = vpack.c.bf16 %v68_v6, %v68_v6 }
  0x3a   :  { %111 = vmatpush1.bf16.msra.mxu0 %v481_v3  ;;  %v485_v7 = vld [vmem:[#allocation7 + $0x4] ss:$8 sps:$4 sm:$0xff]   ;;  %v487_v8 = vld [vmem:[#allocation7] ss:$8 sps:$4 sm:$0xff]   ;;  %v488_v9 = vld [vmem:[#allocation7 + $0x14] ss:$8 sps:$4 sm:$0xff]  }
  0x3b   :  { %112 = vmatprep.subr.bf16.mxu0 %v482_v4  ;;  %359 = vmatprep.subr.bf16.mxu1 %v485_v7  ;;  %v490_v11 = vld [vmem:[#allocation7 + $0x10] ss:$8 sps:$4 sm:$0xff]   ;;  %vm106_vm0 = vcmask 261120   ;;  %v491_v12 = vld [vmem:[#allocation7 + $0x24] ss:$8 sps:$4 sm:$0xff]   ;;  %v77_v41 = vshrl.u32 %v76_v40, 7 }
  0x3c   :  { %360 = vmatpush1.bf16.msra.mxu1 %v487_v8  ;;  %v493_v13 = vld [vmem:[#allocation7 + $0x20] ss:$8 sps:$4 sm:$0xff]   ;;  %v494_v14 = vld [vmem:[#allocation7 + $0x34] ss:$8 sps:$4 sm:$0xff]   ;;  %v496_v15 = vld [vmem:[#allocation7 + $0x30] ss:$8 sps:$4 sm:$0xff]  }
  0x3d   :  { %361 = vmatprep.subr.bf16.mxu1 %v488_v9  ;;  %v497_v16 = vld [vmem:[#allocation7 + $0x44] ss:$8 sps:$4 sm:$0xff]   ;;  %v499_v17 = vld [vmem:[#allocation7 + $0x40] ss:$8 sps:$4 sm:$0xff]   ;;  %v500_v18 = vld [vmem:[#allocation7 + $0x54] ss:$8 sps:$4 sm:$0xff]  }
  0x3e   :  { %113 = vmatpush1.bf16.msra.mxu0 %v484_v5  ;;  %v502_v19 = vld [vmem:[#allocation7 + $0x50] ss:$8 sps:$4 sm:$0xff]   ;;  %v503_v20 = vld [vmem:[#allocation7 + $0x64] ss:$8 sps:$4 sm:$0xff]   ;;  %v505_v21 = vld [vmem:[#allocation7 + $0x60] ss:$8 sps:$4 sm:$0xff]  }
  0x3f   :  { %v506_v22 = vld [vmem:[#allocation7 + $0x74] ss:$8 sps:$4 sm:$0xff]   ;;  %v508_v23 = vld [vmem:[#allocation7 + $0x70] ss:$8 sps:$4 sm:$0xff]   ;;  %v509_v24 = vld [vmem:[#allocation7 + $0x84] ss:$8 sps:$4 sm:$0xff]  }
  0x40   :  { %362 = vmatpush1.bf16.msra.mxu1 %v490_v11  ;;  %v511_v25 = vld [vmem:[#allocation7 + $0x80] ss:$8 sps:$4 sm:$0xff]   ;;  %v512_v26 = vld [vmem:[#allocation7 + $0x94] ss:$8 sps:$4 sm:$0xff]   ;;  %v514_v27 = vld [vmem:[#allocation7 + $0x90] ss:$8 sps:$4 sm:$0xff]  }
  0x41   :  { %439 = vmatmul.mubr.msk.bf16.vlgmr.msra.gmra.mrb[0].mxu0 %vm106_vm0, %v69_v10  ;;  %363 = vmatprep.subr.bf16.mxu1 %v491_v12  ;;  %v515_v28 = vld [vmem:[#allocation7 + $0xa4] ss:$8 sps:$4 sm:$0xff]   ;;  %v517_v29 = vld [vmem:[#allocation7 + $0xa0] ss:$8 sps:$4 sm:$0xff]   ;;  %v518_v30 = vld [vmem:[#allocation7 + $0xb4] ss:$8 sps:$4 sm:$0xff]  }
  0x42   :  { %v520_v31 = vld [vmem:[#allocation7 + $0xb0] ss:$8 sps:$4 sm:$0xff]   ;;  %v521_v32 = vld [vmem:[#allocation7 + $0xc4] ss:$8 sps:$4 sm:$0xff]   ;;  %v523_v33 = vld [vmem:[#allocation7 + $0xc0] ss:$8 sps:$4 sm:$0xff]  }
  0x43   :  { %v524_v34 = vld [vmem:[#allocation7 + $0xd4] ss:$8 sps:$4 sm:$0xff]   ;;  %v526_v35 = vld [vmem:[#allocation7 + $0xd0] ss:$8 sps:$4 sm:$0xff]   ;;  %v527_v36 = vld [vmem:[#allocation7 + $0xe4] ss:$8 sps:$4 sm:$0xff]  }
  0x44   :  { %364 = vmatpush1.bf16.msra.mxu1 %v493_v13  ;;  %v529_v37 = vld [vmem:[#allocation7 + $0xe0] ss:$8 sps:$4 sm:$0xff]   ;;  %v530_v38 = vld [vmem:[#allocation7 + $0xf4] ss:$8 sps:$4 sm:$0xff]   ;;  %v532_v39 = vld [vmem:[#allocation7 + $0xf0] ss:$8 sps:$4 sm:$0xff]  }
  0x45   :  { %365 = vmatprep.subr.bf16.mxu1 %v494_v14  ;;  %v78_v42 = vsub.s32 0, %v77_v41  ;;  %v74_v43 = vld [vmem:[%s708_s2] sm:$0x3]  ;;  %v82_v44 = vsub.s32 1, %v77_v41  ;;  %vm427_vm1 = vcmask 7168  }
  0x46   :  { %v187_v57 = vld [vmem:[%s710_s4] sm:$0x3] }
  0x47   :  { %v79_v45 = vrot.slane %v74_v43, %v78_v42  ;;  %v83_v46 = vrot.slane %v74_v43, %v82_v44  ;;  %v192_v58 = vrot.slane %v187_v57, %v78_v42  ;;  %v196_v59 = vrot.slane %v187_v57, %v82_v44  ;;  %v402_v60 = vld [vmem:[%s711_s5] sm:$0x3] }
  0x48   :  { %366 = vmatpush1.bf16.msra.mxu1 %v496_v15  ;;  %v407_v0 = vrot.slane %v402_v60, %v78_v42  ;;  %v411_v3 = vrot.slane %v402_v60, %v82_v44  ;;  %v472_v10 = vld [vmem:[#allocation2] ss:$0 sm:$0xff] }
  0x49   :  { %367 = vmatprep.subr.bf16.mxu1 %v497_v16 }
  0x4c   :  { %368 = vmatpush1.bf16.msra.mxu1 %v499_v17 }
  0x4d   :  { %369 = vmatprep.subr.bf16.mxu1 %v500_v18 }
  0x50   :  { %370 = vmatpush1.bf16.msra.mxu1 %v502_v19 }
  0x51   :  { %371 = vmatprep.subr.bf16.mxu1 %v503_v20 }
  0x54   :  { %372 = vmatpush1.bf16.msra.mxu1 %v505_v21 }
  0x55   :  { %373 = vmatprep.subr.bf16.mxu1 %v506_v22 }
  0x58   :  { %374 = vmatpush1.bf16.msra.mxu1 %v508_v23 }
  0x59   :  { %375 = vmatprep.subr.bf16.mxu1 %v509_v24 }
  0x5c   :  { %376 = vmatpush1.bf16.msra.mxu1 %v511_v25 }
  0x5d   :  { %377 = vmatprep.subr.bf16.mxu1 %v512_v26 }
  0x60   :  { %378 = vmatpush1.bf16.msra.mxu1 %v514_v27 }
  0x61   :  { %379 = vmatprep.subr.bf16.mxu1 %v515_v28 }
  0x64   :  { %380 = vmatpush1.bf16.msra.mxu1 %v517_v29 }
  0x65   :  { %381 = vmatprep.subr.bf16.mxu1 %v518_v30 }
  0x68   :  { %382 = vmatpush1.bf16.msra.mxu1 %v520_v31 }
  0x69   :  { %383 = vmatprep.subr.bf16.mxu1 %v521_v32 }
  0x6c   :  { %384 = vmatpush1.bf16.msra.mxu1 %v523_v33 }
  0x6d   :  { %385 = vmatprep.subr.bf16.mxu1 %v524_v34 }
  0x70   :  { %386 = vmatpush1.bf16.msra.mxu1 %v526_v35 }
  0x71   :  { %387 = vmatprep.subr.bf16.mxu1 %v527_v36 }
  0x74   :  { %388 = vmatpush1.bf16.msra.mxu1 %v529_v37 }
  0x75   :  { %389 = vmatprep.subr.bf16.mxu1 %v530_v38 }
  0x78   :  { %390 = vmatpush1.bf16.msra.mxu1 %v532_v39 }
 0x114   :  { %v144_v47 = vpop.f32.mrb[0].mxu0 }
 0x115   :  { %v145_v48 = vadd.f32 %v144_v47, %v79_v45  ;;  %v146_v49 = vpop.f32.mrb[1].mxu0 }
 0x116   :  { %v147_v50 = vadd.f32 %v146_v49, %v83_v46  ;;  %v148_v51 = vpop.f32.mrb[2].mxu0 }
 0x117   :  { %v151_v52 = vmax.f32 %v145_v48, 0.0  ;;  %v149_v53 = vpop.f32.mrb[3].mxu0 }
 0x118   :  { %v152_v54 = vmax.f32 %v147_v50, 0.0 }
 0x119   :  { %v153_v56 = vpack.c.bf16 %v151_v52, %v151_v52 }
 0x11a   :  { %v154_v55 = vpack.c.bf16 %v152_v54, %v152_v54 }
 0x11c   :  { %391 = vmatprep.mubr.bf16.mxu1 %v154_v55 }
 0x11d   :  { %392 = vmatmul.mubr.bf16.vlgmr.msra.gmra.mrb[0].mxu1 %v153_v56 }
 0x1f0   :  { %v393_v61 = vpop.f32.mrb[0].mxu1 }
 0x1f1   :  { %v394_v62 = vadd.f32 %v393_v61, %v192_v58  ;;  %v395_v63 = vpop.f32.mrb[1].mxu1 }
 0x1f2   :  { %v396_v1 = vadd.f32 %v395_v63, %v196_v59  ;;  %v397_v2 = vpop.f32.mrb[2].mxu1 }
 0x1f3   :  { %v400_v4 = vmax.f32 %v394_v62, 0.0  ;;  %v398_v5 = vpop.f32.mrb[3].mxu1 }
 0x1f4   :  { %v401_v6 = vmax.f32 %v396_v1, 0.0 }
 0x1f5   :  { %v414_v7 = vmul.f32 %v407_v0, %v400_v4 }
 0x1f6   :  { %v415_v8 = vmul.f32 %v411_v3, %v401_v6 }
 0x1f8   :  { %v416_v9 = vadd.f32 %v415_v8, %v414_v7 }
 0x1fa   :  { %417 = vadd.xlane.f32.xlu0 %v416_v9 }
 0x287   :  { %v418_v11 = vpop.xlane.xlu0 %417 }
 0x288   :  { %v426_v12 = vadd.f32 %v472_v10, %v418_v11 }
 0x28a   :  { %428 = vst.msk [vmem:[%s713_s7] sm:$0xff] %vm427_vm1, %v426_v12 }
 0x28b   :  { %433 = vsyncpa [#allocation4], 1 }
 0x28c   :  { %434 = vsyncpa [#allocation6], 1 }

</bundles_post_ra>
